<compile_context>
chip_gen: v5e
topology: v5e:2x2
jax: 0.10.0
libtpu: 0.0.40
codegen_flags: <defaults>
</compile_context>

<pallas_src>
import functools

import numpy as np
import jax
import jax.numpy as jnp
from jax.experimental import pallas as pl
from jax.experimental.pallas import tpu as pltpu


def _temporal_shift_kernel(x_ref, o_ref, *, n_ch_to_shift, n_shifts, W, L_tile):
    """One (sample, shifted-channel, lane-tile) block of shape (1, D, L_tile)."""
    c = pl.program_id(1)          # channel index inside the shifted prefix
    n = n_ch_to_shift

    x = x_ref[...]                                             # (1, D, Lt)
    # w-position inside each fused H*W row; lane-only so it broadcasts in where.
    lane = jax.lax.broadcasted_iota(jnp.int32, (1, 1, L_tile), dimension=2)
    w = lane % W

    acc = jnp.zeros_like(x)       # torch.zeros_like(x)
    for i in range(n_shifts):     # replay PyTorch's in-place write order
        s = i + 1
        offset = i * 2 * n
        # out[:, c, :, :, :-s] = x[:, c, :, :, s:]   for c < offset + n
        left = pltpu.roll(x, shift=L_tile - s, axis=2)         # roll by -s
        acc = jnp.where(jnp.logical_and(c < offset + n, w < W - s), left, acc)
        # out[:, c, :, :, s:] = x[:, c, :, :, :-s]   for offset+n <= c < offset+2n
        right = pltpu.roll(x, shift=s, axis=2)
        in_right = jnp.logical_and(c >= offset + n, c < offset + 2 * n)
        acc = jnp.where(jnp.logical_and(in_right, w >= s), right, acc)
    o_ref[...] = acc


def _pick_lane_tile(L, W, sublanes, itemsize, budget_bytes=2 * 1024 * 1024):
    """Largest lane tile that divides L, is a multiple of lcm(W, 128) (so a
    roll never crosses a tile and stores stay lane-dense), and keeps one
    (1, D, Lt) block within the per-block VMEM budget."""
    if sublanes * L * itemsize <= budget_bytes:
        return L                                   # full extent fits -> best
    step = int(np.lcm(W, 128))
    t = (budget_bytes // (sublanes * itemsize)) // step * step
    while t >= step:
        if L % t == 0:
            return int(t)
        t -= step
    # TODO(synk): also tile the D (sublane) axis for per-channel slabs that
    # exceed the budget with an un-tileable fused H*W axis.
    return L


@functools.partial(jax.jit, static_argnames=("nth_ch_to_shift", "n_shifts"),
                   donate_argnums=(0,))
def _temporal_shift_impl(x, nth_ch_to_shift, n_shifts):
    assert x.ndim == 5, "expected 5-D input (N, C, D, H, W)"
    assert n_shifts >= 1
    N, C, D, H, W = x.shape
    n = nth_ch_to_shift // C // (2 * n_shifts)     # mirrors the PyTorch formula
    if n == 0:
        # Degenerate config: every channel is a straight copy of x.
        return x
    assert n_shifts < W, "max shift distance (n_shifts) must be < W"
    n_shifted = min(2 * n * n_shifts, C)

    L = H * W
    xr = x.reshape(N * C, D, L)        # adjacent-dim merges only -> no HBM copy
    Lt = _pick_lane_tile(L, W, D, x.dtype.itemsize)
    block_bytes = D * Lt * x.dtype.itemsize

    kernel = functools.partial(_temporal_shift_kernel, n_ch_to_shift=n,
                               n_shifts=n_shifts, W=W, L_tile=Lt)
    spec = pl.BlockSpec((1, D, Lt), lambda nb, cb, lt: (nb * C + cb, 0, lt))

    out = pl.pallas_call(
        kernel,
        out_shape=jax.ShapeDtypeStruct(xr.shape, x.dtype),
        grid=(N, n_shifted, L // Lt),
        in_specs=[spec],
        out_specs=spec,
        # Output buffer IS the input buffer: unshifted channels stay untouched
        # in HBM (zero extra traffic); each shifted block is fully loaded into
        # VMEM before its in-place writeback and a shift never crosses a block,
        # so the aliasing is safe.
        input_output_aliases={0: 0},
        compiler_params=pltpu.CompilerParams(
            dimension_semantics=("parallel", "parallel", "parallel"),
            vmem_limit_bytes=max(32 * 1024 * 1024, 4 * block_bytes + (2 << 20)),
        ),
    )(xr)
    return out.reshape(N, C, D, H, W)


def temporal_shift(x, nth_ch_to_shift=8, n_shifts=1):
    """Pallas implementation of TemporalShift.forward for NCDHW input.

    Note: x is donated (its device buffer is reused in place for the output).
    """
    return _temporal_shift_impl(x, nth_ch_to_shift=int(nth_ch_to_shift),
                                n_shifts=int(n_shifts))


def _reference_temporal_shift(x, nth_ch_to_shift=8, n_shifts=1):
    """NumPy transcription of the PyTorch forward (for verification)."""
    x = np.asarray(x)
    n = nth_ch_to_shift // x.shape[1] // (2 * n_shifts)
    out = np.zeros_like(x)
    offset = 0
    for i in range(n_shifts):
        offset = i * 2 * n
        out[:, :offset + n, :, :, :-(i + 1)] = x[:, :offset + n, :, :, i + 1:]
        out[:, offset + n:offset + 2 * n, :, :, i + 1:] = (
            x[:, offset + n:offset + 2 * n, :, :, :-(i + 1)])
    out[:, offset + 2 * n:] = x[:, offset + 2 * n:]
    return out


if __name__ == "__main__":
    key1, key2 = jax.random.split(jax.random.PRNGKey(0))

    # Primary check: default module config, (N, C, D, H, W); H*W = 256 lanes
    # exercises the lane-dense fused layout.
    N, C, D, H, W = 2, 4, 4, 16, 16
    x = jax.random.normal(key1, (N, C, D, H, W), dtype=jnp.float32)
    x_np = np.asarray(x)                      # snapshot before x is donated
    y = jax.block_until_ready(temporal_shift(x, nth_ch_to_shift=8, n_shifts=1))
    y_ref = _reference_temporal_shift(x_np, nth_ch_to_shift=8, n_shifts=1)
    np.testing.assert_allclose(np.asarray(y), y_ref, rtol=0, atol=0)

    # Secondary check: n_shifts > 1 exercises the telescoped overwrite order
    # plus the untouched (aliased) copy channels.
    x2 = jax.random.normal(key2, (2, 8, 2, 8, 16), dtype=jnp.float32)
    x2_np = np.asarray(x2)
    y2 = jax.block_until_ready(temporal_shift(x2, nth_ch_to_shift=32, n_shifts=2))
    y2_ref = _reference_temporal_shift(x2_np, nth_ch_to_shift=32, n_shifts=2)
    np.testing.assert_allclose(np.asarray(y2), y2_ref, rtol=0, atol=0)

    print("KERNEL_OK")
</pallas_src>

<mosaic_0001>
module attributes {stable_mosaic.version = 11 : i64} {
  func.func @_temporal_shift_kernel(%arg0: i32, %arg1: i32, %arg2: i32, %arg3: memref<1x4x256xf32, #tpu.memory_space<vmem>>, %arg4: memref<1x4x256xf32, #tpu.memory_space<vmem>>) attributes {dimension_semantics = [#tpu.dimension_semantics<parallel>, #tpu.dimension_semantics<parallel>, #tpu.dimension_semantics<parallel>], iteration_bounds = array<i64: 2, 2, 1>, scalar_prefetch = 0 : i64, scratch_operands = 0 : i64, tpu.core_type = #tpu.core_type<tc>, window_params = [{transform_indices = @transform_0, window_bounds = array<i64: 1, 4, 256>}, {transform_indices = @transform_1, window_bounds = array<i64: 1, 4, 256>}]} {
    %c0 = arith.constant 0 : index
    %c0_0 = arith.constant 0 : index
    %c0_1 = arith.constant 0 : index
    %0 = vector.load %arg3[%c0, %c0_0, %c0_1] : memref<1x4x256xf32, #tpu.memory_space<vmem>>, vector<1x4x256xf32>
    %1 = tpu.iota {dimensions = array<i32: 2>} : vector<1x1x256xi32>
    %c16_i32 = arith.constant 16 : i32
    %c0_i32 = arith.constant 0 : i32
    %2 = arith.cmpi eq, %c16_i32, %c0_i32 : i32
    %c1_i32 = arith.constant 1 : i32
    %3 = arith.select %2, %c1_i32, %c16_i32 : i32
    %4 = vector.broadcast %3 : i32 to vector<1x1x256xi32>
    %5 = arith.remsi %1, %4 : vector<1x1x256xi32>
    %c0_i32_2 = arith.constant 0 : i32
    %6 = vector.broadcast %c0_i32_2 : i32 to vector<1x1x256xi32>
    %7 = arith.cmpi ne, %5, %6 : vector<1x1x256xi32>
    %c0_i32_3 = arith.constant 0 : i32
    %8 = vector.broadcast %c0_i32_3 : i32 to vector<1x1x256xi32>
    %9 = arith.cmpi slt, %5, %8 : vector<1x1x256xi32>
    %c0_i32_4 = arith.constant 0 : i32
    %10 = arith.cmpi slt, %3, %c0_i32_4 : i32
    %11 = vector.broadcast %10 : i1 to vector<1x1x256xi1>
    %12 = vector.broadcast %11 : vector<1x1x256xi1> to vector<1x1x256xi1>
    %13 = arith.xori %9, %12 : vector<1x1x256xi1>
    %14 = arith.andi %13, %7 : vector<1x1x256xi1>
    %15 = vector.broadcast %3 : i32 to vector<1x1x256xi32>
    %16 = arith.addi %5, %15 : vector<1x1x256xi32>
    %17 = arith.select %14, %16, %5 : vector<1x1x256xi1>, vector<1x1x256xi32>
    %cst = arith.constant 0.000000e+00 : f32
    %18 = vector.broadcast %cst : f32 to vector<1x4x256xf32>
    %c255_i32 = arith.constant 255 : i32
    %19 = tpu.dynamic_rotate %0 by %c255_i32 dim 2 : vector<1x4x256xf32>, i32 -> vector<1x4x256xf32>
    %c1_i32_5 = arith.constant 1 : i32
    %20 = arith.cmpi slt, %arg1, %c1_i32_5 : i32
    %c15_i32 = arith.constant 15 : i32
    %21 = vector.broadcast %c15_i32 : i32 to vector<1x1x256xi32>
    %22 = arith.cmpi slt, %17, %21 : vector<1x1x256xi32>
    %23 = vector.broadcast %20 : i1 to vector<1x1x256xi1>
    %24 = arith.andi %23, %22 : vector<1x1x256xi1>
    %25 = vector.shape_cast %24 : vector<1x1x256xi1> to vector<1x1x256xi1>
    %26 = vector.broadcast %25 : vector<1x1x256xi1> to vector<1x4x256xi1>
    %27 = arith.select %26, %19, %18 : vector<1x4x256xi1>, vector<1x4x256xf32>
    %c1_i32_6 = arith.constant 1 : i32
    %28 = tpu.dynamic_rotate %0 by %c1_i32_6 dim 2 : vector<1x4x256xf32>, i32 -> vector<1x4x256xf32>
    %c1_i32_7 = arith.constant 1 : i32
    %29 = arith.cmpi sge, %arg1, %c1_i32_7 : i32
    %c2_i32 = arith.constant 2 : i32
    %30 = arith.cmpi slt, %arg1, %c2_i32 : i32
    %31 = arith.andi %29, %30 : i1
    %c1_i32_8 = arith.constant 1 : i32
    %32 = vector.broadcast %c1_i32_8 : i32 to vector<1x1x256xi32>
    %33 = arith.cmpi sge, %17, %32 : vector<1x1x256xi32>
    %34 = vector.broadcast %31 : i1 to vector<1x1x256xi1>
    %35 = arith.andi %34, %33 : vector<1x1x256xi1>
    %36 = vector.shape_cast %35 : vector<1x1x256xi1> to vector<1x1x256xi1>
    %37 = vector.broadcast %36 : vector<1x1x256xi1> to vector<1x4x256xi1>
    %38 = arith.select %37, %28, %27 : vector<1x4x256xi1>, vector<1x4x256xf32>
    %c0_9 = arith.constant 0 : index
    %c0_10 = arith.constant 0 : index
    %c0_11 = arith.constant 0 : index
    %39 = vector.load %arg4[%c0_9, %c0_10, %c0_11] : memref<1x4x256xf32, #tpu.memory_space<vmem>>, vector<1x4x256xf32>
    tpu.vector_store %arg4[%c0_9, %c0_10, %c0_11], %38 {strides = array<i32>} : memref<1x4x256xf32, #tpu.memory_space<vmem>>, vector<1x4x256xf32>,
    return
  }
  func.func @transform_0(%arg0: i32, %arg1: i32, %arg2: i32) -> (i32, i32, i32) {
    %c4_i32 = arith.constant 4 : i32
    %0 = arith.muli %arg0, %c4_i32 : i32
    %1 = arith.addi %0, %arg1 : i32
    %c0_i32 = arith.constant 0 : i32
    %c0_i32_0 = arith.constant 0 : i32
    return %1, %c0_i32, %arg2 : i32, i32, i32
  }
  func.func @transform_1(%arg0: i32, %arg1: i32, %arg2: i32) -> (i32, i32, i32) {
    %c4_i32 = arith.constant 4 : i32
    %0 = arith.muli %arg0, %c4_i32 : i32
    %1 = arith.addi %0, %arg1 : i32
    %c0_i32 = arith.constant 0 : i32
    %c0_i32_0 = arith.constant 0 : i32
    return %1, %c0_i32, %arg2 : i32, i32, i32
  }
}

</mosaic_0001>

<bundles_post_ra>
// kernel: _temporal_shift_impl.1
= control target key start
LH: loop header
LB: loop body
LE: loop exit
PB: predicated region body
PF: predicated region fallthrough
CT: control target
= control target key end

     0   :  { %s491_s6 = smov 0   ;;  %s493_s7 = smov 0   ;;  %s569_s0 = inlined_call_operand.vmem [shape: f32[8,4,256], index: 0, kind: input, shape index: {}, may-alias: {0,1}]   ;;  %s570_s1 = inlined_call_operand.vmem [shape: f32[8,4,256], index: 1, kind: output, shape index: {}, may-alias: {0,1}]  }
   0x1   :  { %s495_s8 = smov 0   ;;  %s497_s9 = smov 0  }
   0x2   :  { %s499_s10 = smov 0  }
   0x3 LB: > { %s26_s11 = sadd.s32 1, %s469_s8  ;;  %s30_s12 = sadd.s32 1, %s473_s9  ;;  %s477_s10 = sphi %s499_s10, %s11_s10   ;;  %s473_s9 = sphi %s497_s9, %s578_s9   ;;  %s469_s8 = sphi %s495_s8, %s577_s8   ;;  %s465_s7 = sphi %s493_s7, %s576_s7   ;;  %s461_s6 = sphi %s491_s6, %s575_s6  }
   0x4   : > { %p28_p0 = scmp.ge.s32.totalorder %s26_s11, 2  ;;  %p385_p1 = scmp.ge.s32.totalorder %s477_s10, 1 }
   0x5   : > { %p127_p2 = scmp.lt.s32.totalorder %s477_s10, 5 }
   0x6   : > { %s580_s11 = smov (%p28_p0, %s26_s11), 0  ;;  %s582_s12 = smov (!%p28_p0, %s30_s12), %s473_s9 }
   0x7   : > { %p128_p3 = pnand %p385_p1, %p127_p2  ;;  %p32_p4 = scmp.ge.s32.totalorder %s582_s12, 2 }
   0x8   : > { %s386_s13 = sshll.u32 (!%p128_p3), %s465_s7, 2  ;;  %s479_s19 = smov (!%p128_p3), 127  }
   0x9   : > { %s584_s12 = smov (%p32_p4, %s582_s12), 0  ;;  %131 = sbr.rel (%p128_p3) target bundleno = 163 (0xa3), region = 24 }
   0xa   : > { %s160_s14 = sadd.s32 (!%p128_p3), %s461_s6, %s386_s13  ;;  %s480_s20 = smov (!%p128_p3), 1  }
   0xb   : > { %p162_p5 = scmp.lt.s32.totalorder (!%p128_p3), %s160_s14, 7  ;;  %p254_p6 = scmp.ge.s32.totalorder (!%p128_p3), %s461_s6, 1 }
   0xc   : > { %p255_p7 = scmp.lt.s32.totalorder (!%p128_p3), %s461_s6, 2  ;;  %p228_p8 = scmp.lt.s32.totalorder (!%p128_p3), %s461_s6, 1 }
   0xe   : > { %s586_s14 = smov (!%p162_p5, %s160_s14), 7  ;;  %v188_v5 = vlaneseq  ;;  %p256_p9 = pnand %p255_p7, %p254_p6  ;;  %vm274_vm12 = vcmask 1043456  }
   0xf   : > { %s395_s15 = sshll.u32 %s586_s14, 3 }
  0x10   : > { %s169_s18 = scalar_lea.vmem %s569_s0, %s395_s15  ;;  %v189_v6 = vand.u32 127, %v188_v5  ;;  %s183_s25 = scalar_lea.vmem %s570_s1, %s395_s15 }
  0x11   : > { %v187_v0 = vld [vmem:[%s169_s18] sm:$0xff]  ;;  %s231_s21 = scalar_select %p228_p8, 1, 0 }
  0x12   : > { %216 = vst [vmem:[#allocation1] ss:$2 sm:$0xff] %v187_v0  ;;  %v190_v8 = vadd.s32 128, %v189_v6  ;;  %s392_s22 = scalar_select %p256_p9, 0, 1  ;;  %v195_v12 = vand.u32 15, %v189_v6 }
  0x13   : > { %v232_v10 = vstv %s231_s21  ;;  %vm225_vm0 = vcmp.lt.s32.totalorder %v189_v6, 127  ;;  %vm251_vm7 = vcmp.lt.s32.totalorder %v189_v6, 1 }
  0x14   : > { %v202_v9 = vand.u32 15, %v190_v8  ;;  %v261_v13 = vstv %s392_s22  ;;  %vm535_vm2 = vcmp.eq.s32.totalorder %v232_v10, 1  ;;  %vm539_vm5 = vcmp.lt.s32.totalorder %v195_v12, 15 }
  0x15   : > { %vm262_vm4 = vcmp.eq.s32.totalorder %v261_v13, 1  ;;  %vm258_vm8 = vcmp.ge.s32.totalorder %v195_v12, 1  ;;  %vm234_vm10 = vmand %vm535_vm2, %vm539_vm5 }
  0x16   : > { %vm230_vm1 = vcmp.lt.s32.totalorder %v202_v9, 15  ;;  %vm259_vm3 = vcmp.ge.s32.totalorder %v202_v9, 1  ;;  %vm263_vm11 = vmand %vm262_vm4, %vm258_vm8 }
  0x17   : > { %vm235_vm6 = vmand %vm535_vm2, %vm230_vm1 }
  0x18   : > { %vm264_vm9 = vmand %vm262_vm4, %vm259_vm3 }
  0x19   : > { %v217_v1 = vld.sshfl [vmem:[#allocation1] sm:$0xff pattern:$0x75316420]  ;;  %v218_v2 = vld.sshfl [vmem:[#allocation1 + $0x8] sm:$0xff pattern:$0x75316420] }
  0x1a   : > { %221 = vrot.lane.b32.xlu0 %v217_v1, %s479_s19  ;;  %242 = vst [vmem:[#allocation1] ss:$2 sm:$0xff] %v187_v0 }
  0x21   : > { %v243_v3 = vld.sshfl [vmem:[#allocation1] sm:$0xff pattern:$0x75316420]  ;;  %v244_v4 = vld.sshfl [vmem:[#allocation1 + $0x8] sm:$0xff pattern:$0x75316420] }
  0x22   : > { %223 = vrot.lane.b32.xlu0 %v218_v2, %s479_s19  ;;  %247 = vrot.lane.b32.xlu1 %v243_v3, %s480_s20 }
  0x2a   : > { %249 = vrot.lane.b32.xlu1 %v244_v4, %s480_s20 }
  0x8c   : > { %v222_v7 = vpop.permute.xlu0 %221 }
  0x94   : > { %v248_v11 = vpop.permute.xlu1 %247  ;;  %v224_v15 = vpop.permute.xlu0 %223 }
  0x95   : > { %v227_v17 = vsel %vm225_vm0, %v224_v15, %v222_v7  ;;  %v226_v18 = vsel %vm225_vm0, %v222_v7, %v224_v15 }
  0x96   : > { %v241_v20 = vsel %vm235_vm6, %v227_v17, 0.0  ;;  %v240_v24 = vsel %vm234_vm10, %v226_v18, 0.0 }
  0x9c   : > { %v250_v19 = vpop.permute.xlu1 %249 }
  0x9d   : > { %v252_v21 = vsel %vm251_vm7, %v248_v11, %v250_v19  ;;  %v253_v22 = vsel %vm251_vm7, %v250_v19, %v248_v11 }
  0x9e   : > { %v270_v23 = vsel %vm264_vm9, %v252_v21, %v241_v20  ;;  %v269_v26 = vsel %vm263_vm11, %v253_v22, %v240_v24 }
  0x9f   : > { %v273_v25 = vrot.slane %v270_v23, 4 }
  0xa1   : > { %v275_v27 = vsel %vm274_vm12, %v269_v26, %v273_v25 }
  0xa2   : > { %277 = vst [vmem:[%s183_s25] sm:$0xff] %v275_v27 }
  0xa3 PF: > { %s11_s10 = sadd.s32 1, %s477_s10   ;;  %s575_s6 = smov %s469_s8 }
  0xa4   : > { %p8_p10 = scmp.ge.s32.totalorder %s11_s10, 6   ;;  %s576_s7 = smov %s473_s9 }
  0xa5   : > { %s577_s8 = smov %s580_s11  ;;  %s578_s9 = smov %s584_s12 }
  0xa6   :  { %10 = sbr.rel (!%p8_p10) target bundleno = 3 (0x3), region = 54 }

</bundles_post_ra>
